<compile_context>
chip_gen: v5e
topology: v5e:2x2
jax: 0.10.0
libtpu: 0.0.40
codegen_flags: <defaults>
</compile_context>

<pallas_src>
import functools

import jax
import jax.numpy as jnp
from jax import lax
from jax.experimental import pallas as pl
from jax.experimental.pallas import tpu as pltpu


def _pooling1d_kernel(x_ref, o_ref, *, pool_size: int, t_logical: int):
    # x_ref / o_ref: (tile_rows, L) tile where each lane-row holds
    # L // t_logical packed signals of logical length t_logical.
    x = x_ref[...].astype(jnp.float32)
    _, L = x.shape
    pad = pool_size // 2

    # (1, L) lane index -> logical time index within each packed segment.
    col = lax.broadcasted_iota(jnp.int32, (1, L), 1)
    t = col if L == t_logical else col % t_logical

    ssum = x  # d == 0 tap: always valid, no roll / mask needed.
    for d in range(-pad, pad + 1):
        if d == 0:
            continue
        # shifted[p] = x[p + d] (wraps around the L lanes); the logical-time
        # mask kills both boundary wrap-around and cross-segment leakage.
        shifted = pltpu.roll(x, (-d) % L, 1)  # axis must be non-negative
        valid = (t + d >= 0) & (t + d <= t_logical - 1)  # (1, L)
        ssum = ssum + jnp.where(valid, shifted, 0.0)

    # count_include_pad=False valid-tap count, function of t only.
    cnt = (jnp.minimum(t, pad) + jnp.minimum(t_logical - 1 - t, pad) + 1
           ).astype(jnp.float32)
    # (1, L) row, off the critical path; exact keeps bit-parity with a divide
    # (approx=True would also be fine perf-wise).
    inv_c = pl.reciprocal(cnt, approx=False)
    o_ref[...] = (ssum * inv_c - x).astype(o_ref.dtype)


def pooling1d(x: jax.Array, pool_size: int = 3,
              *, target_block_bytes: int = 4 * 1024 * 1024,
              vmem_limit_bytes: int = 48 * 1024 * 1024) -> jax.Array:
    """x: [B, C, T]. Returns AvgPool1d(k, stride=1, pad=k//2,
    count_include_pad=False)(x) - x  (PyTorch Pooling1D semantics)."""
    if pool_size % 2 != 1:
        # Even kernels would change the output length in PyTorch; not modeled.
        raise ValueError("pool_size must be odd to keep the output length T")
    B, C, T = x.shape
    rows = B * C
    x2d = x.reshape(rows, T)

    # Lane-dense packing: only when it is a pure (free) reshape.
    npack = 1
    if T < 128 and T % 128 != 0 and 128 % T == 0 and rows % (128 // T) == 0:
        npack = 128 // T
    # TODO(synk): for general T (neither a divisor nor a multiple of 128) we
    # keep L = T (full-dim lane block, masked tail stores) rather than pad the
    # lane axis -- padding would add HBM traffic to a mem-bound op.
    prow = rows // npack
    L = npack * T
    x_packed = x2d.reshape(prow, L)  # contiguous -> free reshape

    # Row tiling: multiple of the packed sublane factor, ~target_block_bytes,
    # but capped so the grid has >= 2 steps when possible (v7x megacore).
    itemsize = jnp.dtype(x.dtype).itemsize
    sublane = {4: 8, 2: 16, 1: 32}.get(itemsize, 8)
    row_bytes = max(1, L * itemsize)
    tile_rows = max(sublane, (target_block_bytes // row_bytes) // sublane * sublane)
    half_rows = pl.cdiv(pl.cdiv(prow, 2), sublane) * sublane
    tile_rows = min(tile_rows, max(sublane, half_rows))

    grid = (pl.cdiv(prow, tile_rows),)  # ragged last block is masked by Pallas

    kernel = functools.partial(_pooling1d_kernel, pool_size=pool_size,
                               t_logical=T)
    out_packed = pl.pallas_call(
        kernel,
        out_shape=jax.ShapeDtypeStruct((prow, L), x.dtype),
        grid=grid,
        in_specs=[pl.BlockSpec((tile_rows, L), lambda i: (i, 0))],
        out_specs=pl.BlockSpec((tile_rows, L), lambda i: (i, 0)),
        compiler_params=pltpu.CompilerParams(
            dimension_semantics=("parallel",),
            # 2x(in + out) double buffers (~4 x 4 MiB) + a few full-tile f32
            # temporaries stay under this cap, which itself fits v7x's 64 MiB.
            vmem_limit_bytes=vmem_limit_bytes,
        ),
    )(x_packed)

    return out_packed.reshape(B, C, T)


def _reference_pooling1d(x: jax.Array, pool_size: int = 3) -> jax.Array:
    """Pure-JAX reference: AvgPool1d(k, 1, k//2, count_include_pad=False) - x."""
    B, C, T = x.shape
    pad = pool_size // 2
    xf = x.astype(jnp.float32)
    xp = jnp.pad(xf, ((0, 0), (0, 0), (pad, pad)))
    ones = jnp.pad(jnp.ones((1, 1, T), jnp.float32), ((0, 0), (0, 0), (pad, pad)))
    ssum = jnp.zeros_like(xf)
    cnt = jnp.zeros((1, 1, T), jnp.float32)
    for d in range(pool_size):
        ssum = ssum + xp[:, :, d:d + T]
        cnt = cnt + ones[:, :, d:d + T]
    return (ssum / cnt - xf).astype(x.dtype)


if __name__ == "__main__":
    k0, k1, k2 = jax.random.split(jax.random.PRNGKey(0), 3)

    # Case 1: EEG-like [B, C, T] with short T -> 8 signals packed per 128-lane
    # row via a free reshape (lane-dense stores).
    B, C, T = 2, 4, 16
    x1 = jax.random.normal(k0, (B, C, T), dtype=jnp.float32)
    out1 = jax.block_until_ready(pooling1d(x1, pool_size=3))
    ref1 = _reference_pooling1d(x1, pool_size=3)
    assert out1.shape == (B, C, T)
    assert jnp.allclose(out1, ref1, atol=1e-5, rtol=1e-5), "mismatch (case 1)"

    # Case 2: ragged row grid (15 rows, tile_rows=8 -> 2 steps, last block
    # masked by Pallas, no wrapper pad/slice) and an unpacked lane path.
    x2 = jax.random.normal(k1, (3, 5, 160), dtype=jnp.float32)
    out2 = jax.block_until_ready(pooling1d(x2, pool_size=3))
    ref2 = _reference_pooling1d(x2, pool_size=3)
    assert jnp.allclose(out2, ref2, atol=1e-5, rtol=1e-5), "mismatch (case 2)"

    # Case 3: T already a multiple of 128, larger pool_size, 2-step grid.
    x3 = jax.random.normal(k2, (4, 8, 128), dtype=jnp.float32)
    out3 = jax.block_until_ready(pooling1d(x3, pool_size=5))
    ref3 = _reference_pooling1d(x3, pool_size=5)
    assert jnp.allclose(out3, ref3, atol=1e-5, rtol=1e-5), "mismatch (case 3)"

    print("KERNEL_OK")
</pallas_src>

<mosaic_0001>
module attributes {stable_mosaic.version = 11 : i64} {
  func.func @_pooling1d_kernel(%arg0: i32, %arg1: memref<8x128xf32, #tpu.memory_space<vmem>>, %arg2: memref<8x128xf32, #tpu.memory_space<vmem>>) attributes {dimension_semantics = [#tpu.dimension_semantics<parallel>], iteration_bounds = array<i64: 1>, scalar_prefetch = 0 : i64, scratch_operands = 0 : i64, tpu.core_type = #tpu.core_type<tc>, window_params = [{transform_indices = @transform_0, window_bounds = array<i64: 8, 128>}, {transform_indices = @transform_1, window_bounds = array<i64: 8, 128>}]} {
    %c0 = arith.constant 0 : index
    %c0_0 = arith.constant 0 : index
    %0 = vector.load %arg1[%c0, %c0_0] : memref<8x128xf32, #tpu.memory_space<vmem>>, vector<8x128xf32>
    %1 = tpu.iota {dimensions = array<i32: 1>} : vector<1x128xi32>
    %c16_i32 = arith.constant 16 : i32
    %c0_i32 = arith.constant 0 : i32
    %2 = arith.cmpi eq, %c16_i32, %c0_i32 : i32
    %c1_i32 = arith.constant 1 : i32
    %3 = arith.select %2, %c1_i32, %c16_i32 : i32
    %4 = vector.broadcast %3 : i32 to vector<1x128xi32>
    %5 = arith.remsi %1, %4 : vector<1x128xi32>
    %c0_i32_1 = arith.constant 0 : i32
    %6 = vector.broadcast %c0_i32_1 : i32 to vector<1x128xi32>
    %7 = arith.cmpi ne, %5, %6 : vector<1x128xi32>
    %c0_i32_2 = arith.constant 0 : i32
    %8 = vector.broadcast %c0_i32_2 : i32 to vector<1x128xi32>
    %9 = arith.cmpi slt, %5, %8 : vector<1x128xi32>
    %c0_i32_3 = arith.constant 0 : i32
    %10 = arith.cmpi slt, %3, %c0_i32_3 : i32
    %11 = vector.broadcast %10 : i1 to vector<1x128xi1>
    %12 = vector.broadcast %11 : vector<1x128xi1> to vector<1x128xi1>
    %13 = arith.xori %9, %12 : vector<1x128xi1>
    %14 = arith.andi %13, %7 : vector<1x128xi1>
    %15 = vector.broadcast %3 : i32 to vector<1x128xi32>
    %16 = arith.addi %5, %15 : vector<1x128xi32>
    %17 = arith.select %14, %16, %5 : vector<1x128xi1>, vector<1x128xi32>
    %c1_i32_4 = arith.constant 1 : i32
    %18 = tpu.dynamic_rotate %0 by %c1_i32_4 dim 1 : vector<8x128xf32>, i32 -> vector<8x128xf32>
    %c-1_i32 = arith.constant -1 : i32
    %19 = vector.broadcast %c-1_i32 : i32 to vector<1x128xi32>
    %20 = arith.addi %17, %19 : vector<1x128xi32>
    %c0_i32_5 = arith.constant 0 : i32
    %21 = vector.broadcast %c0_i32_5 : i32 to vector<1x128xi32>
    %22 = arith.cmpi sge, %20, %21 : vector<1x128xi32>
    %c-1_i32_6 = arith.constant -1 : i32
    %23 = vector.broadcast %c-1_i32_6 : i32 to vector<1x128xi32>
    %24 = arith.addi %17, %23 : vector<1x128xi32>
    %c15_i32 = arith.constant 15 : i32
    %25 = vector.broadcast %c15_i32 : i32 to vector<1x128xi32>
    %26 = arith.cmpi sle, %24, %25 : vector<1x128xi32>
    %27 = arith.andi %22, %26 : vector<1x128xi1>
    %cst = arith.constant 0.000000e+00 : f32
    %28 = vector.shape_cast %27 : vector<1x128xi1> to vector<1x128xi1>
    %29 = vector.broadcast %28 : vector<1x128xi1> to vector<8x128xi1>
    %30 = vector.broadcast %cst : f32 to vector<8x128xf32>
    %31 = arith.select %29, %18, %30 : vector<8x128xi1>, vector<8x128xf32>
    %32 = arith.addf %0, %31 : vector<8x128xf32>
    %c127_i32 = arith.constant 127 : i32
    %33 = tpu.dynamic_rotate %0 by %c127_i32 dim 1 : vector<8x128xf32>, i32 -> vector<8x128xf32>
    %c1_i32_7 = arith.constant 1 : i32
    %34 = vector.broadcast %c1_i32_7 : i32 to vector<1x128xi32>
    %35 = arith.addi %17, %34 : vector<1x128xi32>
    %c0_i32_8 = arith.constant 0 : i32
    %36 = vector.broadcast %c0_i32_8 : i32 to vector<1x128xi32>
    %37 = arith.cmpi sge, %35, %36 : vector<1x128xi32>
    %c1_i32_9 = arith.constant 1 : i32
    %38 = vector.broadcast %c1_i32_9 : i32 to vector<1x128xi32>
    %39 = arith.addi %17, %38 : vector<1x128xi32>
    %c15_i32_10 = arith.constant 15 : i32
    %40 = vector.broadcast %c15_i32_10 : i32 to vector<1x128xi32>
    %41 = arith.cmpi sle, %39, %40 : vector<1x128xi32>
    %42 = arith.andi %37, %41 : vector<1x128xi1>
    %cst_11 = arith.constant 0.000000e+00 : f32
    %43 = vector.shape_cast %42 : vector<1x128xi1> to vector<1x128xi1>
    %44 = vector.broadcast %43 : vector<1x128xi1> to vector<8x128xi1>
    %45 = vector.broadcast %cst_11 : f32 to vector<8x128xf32>
    %46 = arith.select %44, %33, %45 : vector<8x128xi1>, vector<8x128xf32>
    %47 = arith.addf %32, %46 : vector<8x128xf32>
    %c1_i32_12 = arith.constant 1 : i32
    %48 = vector.broadcast %c1_i32_12 : i32 to vector<1x128xi32>
    %49 = arith.minsi %17, %48 : vector<1x128xi32>
    %c15_i32_13 = arith.constant 15 : i32
    %50 = vector.broadcast %c15_i32_13 : i32 to vector<1x128xi32>
    %51 = arith.subi %50, %17 : vector<1x128xi32>
    %c1_i32_14 = arith.constant 1 : i32
    %52 = vector.broadcast %c1_i32_14 : i32 to vector<1x128xi32>
    %53 = arith.minsi %51, %52 : vector<1x128xi32>
    %54 = arith.addi %49, %53 : vector<1x128xi32>
    %c1_i32_15 = arith.constant 1 : i32
    %55 = vector.broadcast %c1_i32_15 : i32 to vector<1x128xi32>
    %56 = arith.addi %54, %55 : vector<1x128xi32>
    %57 = arith.sitofp %56 : vector<1x128xi32> to vector<1x128xf32>
    %58 = tpu.reciprocal %57 : vector<1x128xf32> -> vector<1x128xf32>
    %59 = vector.broadcast %58 : vector<1x128xf32> to vector<8x128xf32>
    %60 = arith.mulf %47, %59 : vector<8x128xf32>
    %61 = arith.subf %60, %0 : vector<8x128xf32>
    %c0_16 = arith.constant 0 : index
    %c0_17 = arith.constant 0 : index
    %62 = vector.load %arg2[%c0_16, %c0_17] : memref<8x128xf32, #tpu.memory_space<vmem>>, vector<8x128xf32>
    tpu.vector_store %arg2[%c0_16, %c0_17], %61 {strides = array<i32>} : memref<8x128xf32, #tpu.memory_space<vmem>>, vector<8x128xf32>,
    return
  }
  func.func @transform_0(%arg0: i32) -> (i32, i32) {
    %c0_i32 = arith.constant 0 : i32
    %c0_i32_0 = arith.constant 0 : i32
    return %arg0, %c0_i32 : i32, i32
  }
  func.func @transform_1(%arg0: i32) -> (i32, i32) {
    %c0_i32 = arith.constant 0 : i32
    %c0_i32_0 = arith.constant 0 : i32
    return %arg0, %c0_i32 : i32, i32
  }
}

</mosaic_0001>

<bundles_post_ra>
// kernel: tpu_custom_call.1
= control target key start
LH: loop header
LB: loop body
LE: loop exit
PB: predicated region body
PF: predicated region fallthrough
CT: control target
= control target key end

     0   :  { %6 = vsyncpa [#allocation3], 0  ;;  %s191_s0 = inlined_call_operand.hbm [shape: f32[1,128], index: 0, kind: input, shape index: {}]   ;;  %s192_s1 = inlined_call_operand.hbm [shape: f32[1,128], index: 1, kind: output, shape index: {}]  }
   0x1   :  { %7 = vsyncpa [#allocation4], 0 }
   0x2   :  { %11 = vsyncadd [#allocation3], 112  ;;  %s12_s8 = sshll.u32 %s191_s0, 4  ;;  %s163_s9 = smov [#allocation2]   ;;  %s13_s8 = int_to_ptr.hbm [resolvable:$true] %s12_s8 }
   0x3   :  { %s14_s10 = sshll.u32 %s163_s9, 4  ;;  %s164_s11 = smov 16   ;;  %s15_s10 = int_to_ptr.vmem [resolvable:$true] %s14_s10 }
   0x4   :  { %s165_s12 = smov 1  }
   0x5   :  { %20 = dma.hbm_to_vmem [thread:$0]  %s13_s8, 16, %s15_s10, [#allocation3], %s164_s11, %s164_s11, %s165_s12  }
   0x6   :  { %159 = dma.done.wait [#allocation3], 128  }
   0x7   :  { %160 = vsyncadd [#allocation3], 4294967168  ;;  %v25_v0 = vld [vmem:[#allocation2] sm:$0xff]  ;;  %s166_s13 = smov 127   ;;  %v26_v1 = vlaneseq }
   0x8   :  { %40 = vrot.lane.b32.xlu0 %v25_v0, %s165_s12 }
   0x9   :  { %v27_v2 = vand.u32 127, %v26_v1 }
   0xb   :  { %v32_v3 = vand.u32 15, %v27_v2 }
   0xd   :  { %v62_v4 = vsub.s32 15, %v32_v3  ;;  %vm60_vm0 = vcmp.lt.s32.totalorder %v32_v3, 1  ;;  %v42_v13 = vadd.s32 4294967295, %v32_v3  ;;  %v52_v17 = vadd.s32 1, %v32_v3 }
   0xe   :  { %v61_v5 = vsel %vm60_vm0, %v32_v3, 1 }
   0xf   :  { %vm63_vm1 = vcmp.lt.s32.totalorder %v62_v4, 1  ;;  %vm43_vm4 = vcmp.ge.s32.totalorder %v42_v13, 0  ;;  %vm54_vm6 = vcmp.le.s32.totalorder %v52_v17, 15 }
  0x10   :  { %50 = vrot.lane.b32.xlu0 %v25_v0, %s166_s13  ;;  %v64_v6 = vsel %vm63_vm1, %v62_v4, 1 }
  0x11   :  { %v65_v7 = vadd.s32 %v64_v6, %v61_v5 }
  0x13   :  { %v66_v8 = vadd.s32 1, %v65_v7 }
  0x15   :  { %v67_v9 = vcvt.s32.f32 %v66_v8 }
  0x17   :  { %109 = vrcp.f32 %v67_v9  ;;  %vm73_vm2 = vweird.f32 %v67_v9  ;;  %v79_v16 = vand.u32 2147483648, %v67_v9  ;;  %v77_v19 = vand.u32 2147483647, %v67_v9 }
  0x19   :  { %v80_v21 = vor.u32 1.1754944e-38, %v79_v16  ;;  %vm78_vm7 = vcmp.eq.f32.partialorder %v77_v19, 8.507059e+37 }
  0x1d   :  { %v110_v10 = vpop.eup %109 }
  0x1e   :  { %v69_v11 = vmul.f32 %v110_v10, %v67_v9  ;;  %vm74_vm3 = vweird.f32 %v110_v10 }
  0x1f   :  { %vm75_vm5 = vmor %vm73_vm2, %vm74_vm3 }
  0x20   :  { %v70_v12 = vsub.f32 1.0, %v69_v11 }
  0x22   :  { %v71_v14 = vmul.f32 %v110_v10, %v70_v12 }
  0x24   :  { %v72_v18 = vadd.f32 %v110_v10, %v71_v14 }
  0x26   :  { %v76_v22 = vsel %vm75_vm5, %v110_v10, %v72_v18 }
  0x27   :  { %v81_v25 = vsel %vm78_vm7, %v80_v21, %v76_v22 }
  0x7a   :  { %v41_v15 = vpop.permute.xlu0 %40 }
  0x7b   :  { %v48_v20 = vsel %vm43_vm4, %v41_v15, 0.0 }
  0x7c   :  { %v49_v23 = vadd.f32 %v48_v20, %v25_v0 }
  0x82   :  { %v51_v24 = vpop.permute.xlu0 %50 }
  0x83   :  { %v58_v26 = vsel %vm54_vm6, %v51_v24, 0.0 }
  0x84   :  { %v59_v27 = vadd.f32 %v58_v26, %v49_v23 }
  0x86   :  { %v82_v28 = vmul.f32 %v81_v25, %v59_v27 }
  0x88   :  { %v83_v29 = vsub.f32 %v82_v28, %v25_v0 }
  0x8a   :  { %84 = vst [vmem:[#allocation5] sm:$0xff] %v83_v29 }
  0x8b   :  { %88 = vsyncadd [#allocation4], 112  ;;  %s91_s15 = sshll.u32 %s192_s1, 4  ;;  %s167_s16 = smov [#allocation5]   ;;  %s92_s15 = int_to_ptr.hbm [resolvable:$true] %s91_s15 }
  0x8c   :  { %s89_s17 = sshll.u32 %s167_s16, 4  ;;  %s90_s17 = int_to_ptr.vmem [resolvable:$true] %s89_s17 }
  0x8d   :  { %97 = dma.vmem_to_hbm [thread:$0]  %s90_s17, 16, %s92_s15, [#allocation4], %s164_s11, %s164_s11, %s165_s12  }
  0x8e   :  { %161 = dma.done.wait [#allocation4], 128  }
  0x8f   :  { %162 = vsyncadd [#allocation4], 4294967168 }
  0x90   :  { %102 = vsyncpa [#allocation3], 1 }
  0x91   :  { %103 = vsyncpa [#allocation4], 1 }

</bundles_post_ra>
